<compile_context>
chip_gen: v7x
topology: tpu7x:2x2x1
jax: 0.10.0
libtpu: 0.0.40
codegen_flags: <defaults>
</compile_context>

<pallas_src>
import functools

import jax
import jax.numpy as jnp
from jax.experimental import pallas as pl
from jax.experimental.pallas import tpu as pltpu


def _round_up(x, m):
    return ((x + m - 1) // m) * m


def _pick_row_tile(n):
    # Multiple of 8 (f32 sublane), capped at 256, small enough to give >= 2
    # grid steps once n is large enough to split (pipelining + megacore).
    if n <= 16:
        return _round_up(n, 8)
    half = max(8, (n // 2 // 8) * 8)
    return min(256, half)


def _fused_qkv_kernel(x_ref, w_ref, b_ref, o_ref, acc_ref):
    """One (tm, tk) x-tile times one (tk, n_out) fused-weight tile.

    Grid = (rows, K). K is the reduction axis (last, "arbitrary"); the f32
    accumulator lives in VMEM scratch and the output block is written once on
    the final K step (bias add + cast).
    """
    k = pl.program_id(1)

    @pl.when(k == 0)
    def _():
        acc_ref[...] = jnp.zeros_like(acc_ref)

    acc_ref[...] += jnp.dot(x_ref[...], w_ref[...],
                            preferred_element_type=jnp.float32)

    @pl.when(k == pl.num_programs(1) - 1)
    def _():
        o_ref[...] = (acc_ref[...] + b_ref[...]).astype(o_ref.dtype)


@functools.partial(jax.jit, static_argnames=("num_heads", "row_tile", "k_tile"))
def qkv_lin(inputs, wq, bq, wk, bk, wv, bv, *, num_heads,
            row_tile=None, k_tile=None):
    """Pallas equivalent of QKVLin.forward.

    inputs: (n, h_dim)
    wq/wk : (h_dim, key_dim)   (already transposed vs. torch's (out, in))
    wv    : (h_dim, h_dim)
    bq/bk : (key_dim,)   bv: (h_dim,)
    returns [q, k, v] with shapes
      (n, H, key_dim//H), (n, H, key_dim//H), (n, H, h_dim//H)
    """
    n, h_dim = inputs.shape
    key_dim = wq.shape[1]
    n_out = 2 * key_dim + h_dim

    # Fuse the three projections into one wide matmul. (In a real model the
    # fused weight would be prepared once, outside the per-step jit.)
    w_fused = jnp.concatenate([wq, wk, wv], axis=1)              # (h_dim, n_out)
    b_fused = jnp.concatenate([bq, bk, bv]).reshape(1, n_out)    # (1, n_out)

    # ---- tile selection -------------------------------------------------
    tm = row_tile if row_tile is not None else _pick_row_tile(n)
    tm = _round_up(max(tm, 8), 8)
    tk = k_tile if k_tile is not None else min(512, _round_up(h_dim, 128))
    tk = _round_up(max(tk, 128), 128)

    # Zero-pad rows / reduction dim so the tiles divide evenly (zeros are an
    # exact no-op for the dot product; padded rows are sliced off afterwards).
    n_pad = _round_up(n, tm)
    h_pad = _round_up(h_dim, tk)
    x_p = inputs
    if n_pad != n or h_pad != h_dim:
        x_p = jnp.pad(inputs, ((0, n_pad - n), (0, h_pad - h_dim)))
    w_p = w_fused if h_pad == h_dim else jnp.pad(
        w_fused, ((0, h_pad - h_dim), (0, 0)))

    grid = (n_pad // tm, h_pad // tk)

    itemsize = jnp.dtype(inputs.dtype).itemsize
    cost = pl.CostEstimate(
        flops=2 * n_pad * h_pad * n_out,
        transcendentals=0,
        bytes_accessed=(x_p.size + w_p.size + b_fused.size
                        + n_pad * n_out) * itemsize,
    )

    out = pl.pallas_call(
        _fused_qkv_kernel,
        out_shape=jax.ShapeDtypeStruct((n_pad, n_out), inputs.dtype),
        grid_spec=pltpu.PrefetchScalarGridSpec(
            num_scalar_prefetch=0,
            grid=grid,
            in_specs=[
                pl.BlockSpec((tm, tk), lambda i, k: (i, k)),      # x tile
                pl.BlockSpec((tk, n_out), lambda i, k: (k, 0)),   # fused W
                pl.BlockSpec((1, n_out), lambda i, k: (0, 0)),    # fused bias
            ],
            out_specs=pl.BlockSpec((tm, n_out), lambda i, k: (i, 0)),
            scratch_shapes=[pltpu.VMEM((tm, n_out), jnp.float32)],
        ),
        compiler_params=pltpu.CompilerParams(
            # Rows are independent (megacore-shardable); K is the reduction.
            dimension_semantics=("parallel", "arbitrary"),
            # Headroom below v7x's 64 MiB/TC; above the 16/32 MiB defaults.
            vmem_limit_bytes=48 * 1024 * 1024,
        ),
        cost_estimate=cost,
    )(x_p, w_p, b_fused)

    # Split fused output and apply the metadata-only head reshape.
    q = out[:n, :key_dim].reshape(n, num_heads, key_dim // num_heads)
    k = out[:n, key_dim:2 * key_dim].reshape(n, num_heads, key_dim // num_heads)
    v = out[:n, 2 * key_dim:].reshape(n, num_heads, h_dim // num_heads)
    return [q, k, v]


if __name__ == "__main__":
    # Small shapes consistent with QKVLin(h_dim, key_dim, num_heads), but big
    # enough that the fused output is lane-dense and the row grid has 2 steps.
    h_dim, key_dim, num_heads = 128, 64, 4
    n = 256  # number of nodes / rows

    key = jax.random.PRNGKey(0)
    kx, kwq, kbq, kwk, kbk, kwv, kbv = jax.random.split(key, 7)

    inputs = jax.random.normal(kx, (n, h_dim), dtype=jnp.float32)

    # Torch Linear params (W is (out, in), b is (out,)); stored here
    # pre-transposed as (in, out) for the kernel.
    scale = 1.0 / jnp.sqrt(h_dim)
    wq = jax.random.uniform(kwq, (h_dim, key_dim), jnp.float32, -scale, scale)
    bq = jax.random.uniform(kbq, (key_dim,), jnp.float32, -scale, scale)
    wk = jax.random.uniform(kwk, (h_dim, key_dim), jnp.float32, -scale, scale)
    bk = jax.random.uniform(kbk, (key_dim,), jnp.float32, -scale, scale)
    wv = jax.random.uniform(kwv, (h_dim, h_dim), jnp.float32, -scale, scale)
    bv = jax.random.uniform(kbv, (h_dim,), jnp.float32, -scale, scale)

    q, k, v = qkv_lin(inputs, wq, bq, wk, bk, wv, bv, num_heads=num_heads)
    jax.block_until_ready((q, k, v))

    # Cross-check against a plain-JAX reference of the torch forward.
    hi = jax.lax.Precision.HIGHEST
    q_ref = (jnp.dot(inputs, wq, precision=hi) + bq).reshape(n, num_heads, -1)
    k_ref = (jnp.dot(inputs, wk, precision=hi) + bk).reshape(n, num_heads, -1)
    v_ref = (jnp.dot(inputs, wv, precision=hi) + bv).reshape(n, num_heads, -1)

    assert q.shape == (n, num_heads, key_dim // num_heads)
    assert k.shape == (n, num_heads, key_dim // num_heads)
    assert v.shape == (n, num_heads, h_dim // num_heads)
    assert jnp.allclose(q, q_ref, atol=1e-4, rtol=1e-4)
    assert jnp.allclose(k, k_ref, atol=1e-4, rtol=1e-4)
    assert jnp.allclose(v, v_ref, atol=1e-4, rtol=1e-4)

    print("KERNEL_OK")
</pallas_src>

<mosaic_0001>
module attributes {stable_mosaic.version = 11 : i64} {
  func.func @_fused_qkv_kernel(%arg0: i32, %arg1: i32, %arg2: memref<128x128xf32, #tpu.memory_space<vmem>>, %arg3: memref<128x256xf32, #tpu.memory_space<vmem>>, %arg4: memref<1x256xf32, #tpu.memory_space<vmem>>, %arg5: memref<128x256xf32, #tpu.memory_space<vmem>>, %arg6: memref<128x256xf32, #tpu.memory_space<vmem>>) attributes {dimension_semantics = [#tpu.dimension_semantics<parallel>, #tpu.dimension_semantics<arbitrary>], iteration_bounds = array<i64: 2, 1>, scalar_prefetch = 0 : i64, scratch_operands = 1 : i64, tpu.core_type = #tpu.core_type<tc>, window_params = [{transform_indices = @transform_0, window_bounds = array<i64: 128, 128>}, {transform_indices = @transform_1, window_bounds = array<i64: 128, 256>}, {pipeline_mode = #tpu.pipeline_mode<synchronous>, transform_indices = @transform_2, window_bounds = array<i64: 1, 256>}, {transform_indices = @transform_3, window_bounds = array<i64: 128, 256>}]} {
    %c0_i32 = arith.constant 0 : i32
    %0 = arith.cmpi eq, %arg1, %c0_i32 : i32
    %1 = arith.extui %0 : i1 to i32
    %c0_i32_0 = arith.constant 0 : i32
    %2 = arith.cmpi ne, %1, %c0_i32_0 : i32
    scf.if %2 {
      %cst_10 = arith.constant 0.000000e+00 : f32
      %12 = vector.broadcast %cst_10 : f32 to vector<128x256xf32>
      %c0_11 = arith.constant 0 : index
      %c0_12 = arith.constant 0 : index
      %13 = vector.load %arg6[%c0_11, %c0_12] : memref<128x256xf32, #tpu.memory_space<vmem>>, vector<128x256xf32>
      tpu.vector_store %arg6[%c0_11, %c0_12], %12 {strides = array<i32>} : memref<128x256xf32, #tpu.memory_space<vmem>>, vector<128x256xf32>,
    } else {
    }
    %c0 = arith.constant 0 : index
    %c0_1 = arith.constant 0 : index
    %3 = vector.load %arg6[%c0, %c0_1] : memref<128x256xf32, #tpu.memory_space<vmem>>, vector<128x256xf32>
    %c0_2 = arith.constant 0 : index
    %c0_3 = arith.constant 0 : index
    %4 = vector.load %arg2[%c0_2, %c0_3] : memref<128x128xf32, #tpu.memory_space<vmem>>, vector<128x128xf32>
    %c0_4 = arith.constant 0 : index
    %c0_5 = arith.constant 0 : index
    %5 = vector.load %arg3[%c0_4, %c0_5] : memref<128x256xf32, #tpu.memory_space<vmem>>, vector<128x256xf32>
    %cst = arith.constant dense<0.000000e+00> : vector<128x256xf32>
    %6 = tpu.matmul %4, %5, %cst {dimension_numbers = #tpu.dot_dimension_numbers<[1], [0], [0], [1], [0, 0, 1, 1], [], []>} : vector<128x128xf32>, vector<128x256xf32>, vector<128x256xf32> -> vector<128x256xf32>
    %7 = arith.addf %3, %6 : vector<128x256xf32>
    %c0_6 = arith.constant 0 : index
    %c0_7 = arith.constant 0 : index
    %8 = vector.load %arg6[%c0_6, %c0_7] : memref<128x256xf32, #tpu.memory_space<vmem>>, vector<128x256xf32>
    tpu.vector_store %arg6[%c0_6, %c0_7], %7 {strides = array<i32>} : memref<128x256xf32, #tpu.memory_space<vmem>>, vector<128x256xf32>,
    %c0_i32_8 = arith.constant 0 : i32
    %9 = arith.cmpi eq, %arg1, %c0_i32_8 : i32
    %10 = arith.extui %9 : i1 to i32
    %c0_i32_9 = arith.constant 0 : i32
    %11 = arith.cmpi ne, %10, %c0_i32_9 : i32
    scf.if %11 {
      %c0_10 = arith.constant 0 : index
      %c0_11 = arith.constant 0 : index
      %12 = vector.load %arg6[%c0_10, %c0_11] : memref<128x256xf32, #tpu.memory_space<vmem>>, vector<128x256xf32>
      %c0_12 = arith.constant 0 : index
      %c0_13 = arith.constant 0 : index
      %13 = vector.load %arg4[%c0_12, %c0_13] : memref<1x256xf32, #tpu.memory_space<vmem>>, vector<1x256xf32>
      %14 = vector.broadcast %13 : vector<1x256xf32> to vector<128x256xf32>
      %15 = arith.addf %12, %14 : vector<128x256xf32>
      %c0_14 = arith.constant 0 : index
      %c0_15 = arith.constant 0 : index
      %16 = vector.load %arg5[%c0_14, %c0_15] : memref<128x256xf32, #tpu.memory_space<vmem>>, vector<128x256xf32>
      tpu.vector_store %arg5[%c0_14, %c0_15], %15 {strides = array<i32>} : memref<128x256xf32, #tpu.memory_space<vmem>>, vector<128x256xf32>,
    } else {
    }
    return
  }
  func.func @transform_0(%arg0: i32, %arg1: i32) -> (i32, i32) {
    %c0_i32 = arith.constant 0 : i32
    return %arg0, %arg1 : i32, i32
  }
  func.func @transform_1(%arg0: i32, %arg1: i32) -> (i32, i32) {
    %c0_i32 = arith.constant 0 : i32
    %c0_i32_0 = arith.constant 0 : i32
    return %arg1, %c0_i32 : i32, i32
  }
  func.func @transform_2(%arg0: i32, %arg1: i32) -> (i32, i32) {
    %c0_i32 = arith.constant 0 : i32
    %c0_i32_0 = arith.constant 0 : i32
    %c0_i32_1 = arith.constant 0 : i32
    return %c0_i32, %c0_i32_0 : i32, i32
  }
  func.func @transform_3(%arg0: i32, %arg1: i32) -> (i32, i32) {
    %c0_i32 = arith.constant 0 : i32
    %c0_i32_0 = arith.constant 0 : i32
    return %arg0, %c0_i32 : i32, i32
  }
}

</mosaic_0001>

<bundles_post_ra>
// kernel: qkv_lin.1
= control target key start
LH: loop header
LB: loop body
LE: loop exit
PB: predicated region body
PF: predicated region fallthrough
CT: control target
= control target key end

     0   :  { %s893_s12 = smov 0   ;;  %s895_s13 = smov 0   ;;  %s1136_s0 = inlined_call_operand.vmem [shape: f32[256,128], index: 0, kind: input, shape index: {}]   ;;  %s1137_s1 = inlined_call_operand.vmem [shape: f32[128,256], index: 1, kind: input, shape index: {}]   ;;  %s1138_s2 = inlined_call_operand.vmem [shape: f32[1,256], index: 2, kind: input, shape index: {}]   ;;  %s1139_s3 = inlined_call_operand.vmem [shape: f32[256,256], index: 3, kind: output, shape index: {}]  }
   0x1   :  { %s897_s14 = smov 0  }
   0x2 LB: > { %s25_s15 = sadd.s32 1, %s866_s13  ;;  %p766_p0 = scmp.ge.s32.totalorder %s870_s14, 1  ;;  %s870_s14 = sphi %s897_s14, %s13_s14   ;;  %s866_s13 = sphi %s895_s13, %s1141_s13   ;;  %s862_s12 = sphi %s893_s12, %s1140_s12  }
   0x3   : > { %p27_p1 = scmp.ge.s32.totalorder %s25_s15, 2  ;;  %p167_p2 = scmp.lt.s32.totalorder %s870_s14, 3 }
   0x5   : > { %s1143_s15 = smov (%p27_p1, %s25_s15), 0  ;;  %p168_p3 = pnand %p766_p0, %p167_p2 }
   0x6   : > { %v309_v0 = vld [vmem:[%s1137_s1 + $0x8] sm:$0xff] (!%p168_p3)  ;;  %v311_v1 = vld [vmem:[%s1137_s1 + $0x18] sm:$0xff] (!%p168_p3)  ;;  %v308_v2 = vld [vmem:[%s1137_s1] sm:$0xff] (!%p168_p3)  ;;  %v872_v7 = vmov (!%p168_p3), 0.0   ;;  %s767_s10 = sshll.u32 (!%p168_p3), %s862_s12, 4 }
   0x7   : > { %171 = sbr.rel (%p168_p3) target bundleno = 285 (0x11d), region = 32  ;;  %v775_v3 = vpack.c.bf16 (!%p168_p3), %v311_v1, %v309_v0  ;;  %v310_v4 = vld [vmem:[%s1137_s1 + $0x10] sm:$0xff] (!%p168_p3)  ;;  %v313_v5 = vld [vmem:[%s1137_s1 + $0x28] sm:$0xff] (!%p168_p3)  ;;  %v315_v6 = vld [vmem:[%s1137_s1 + $0x38] sm:$0xff] (!%p168_p3)  ;;  %404 = vmatprep.mubr.f32.mxu0 (!%p168_p3), %v872_v7  ;;  %452 = vmatprep.mubr.f32.mxu1 (!%p168_p3), %v872_v7  ;;  %p202_p4 = scmp.lt.s32.totalorder (!%p168_p3), %s767_s10, 31  ;;  %v602_v1 = vlaneseq (!%p168_p3) }
   0x8   : > { %v777_v8 = vpack.c.bf16 (!%p168_p3), %v310_v4, %v308_v2  ;;  %v779_v9 = vpack.c.bf16 (!%p168_p3), %v315_v6, %v313_v5  ;;  %v312_v10 = vld [vmem:[%s1137_s1 + $0x20] sm:$0xff] (!%p168_p3)  ;;  %v314_v11 = vld [vmem:[%s1137_s1 + $0x30] sm:$0xff] (!%p168_p3)  ;;  %v317_v12 = vld [vmem:[%s1137_s1 + $0x48] sm:$0xff] (!%p168_p3) }
   0x9   : > { %776 = vmatprep.subr.bf16.mxu0 (!%p168_p3), %v775_v3  ;;  %807 = vmatprep.subr.bf16.mxu1 (!%p168_p3), %v775_v3  ;;  %v319_v13 = vld [vmem:[%s1137_s1 + $0x58] sm:$0xff] (!%p168_p3)  ;;  %v781_v14 = vpack.c.bf16 (!%p168_p3), %v314_v11, %v312_v10  ;;  %v316_v16 = vld [vmem:[%s1137_s1 + $0x40] sm:$0xff] (!%p168_p3)  ;;  %v318_v17 = vld [vmem:[%s1137_s1 + $0x50] sm:$0xff] (!%p168_p3)  ;;  %v603_v2 = vshrl.u32 (!%p168_p3), %v602_v1, 7 }
   0xa   : > { %778 = vmatpush1.bf16.msra.mxu0 (!%p168_p3), %v777_v8  ;;  %815 = vmatpush1.bf16.msra.mxu1 (!%p168_p3), %v777_v8  ;;  %v783_v15 = vpack.c.bf16 (!%p168_p3), %v319_v13, %v317_v12  ;;  %v321_v18 = vld [vmem:[%s1137_s1 + $0x68] sm:$0xff] (!%p168_p3)  ;;  %v323_v19 = vld [vmem:[%s1137_s1 + $0x78] sm:$0xff] (!%p168_p3)  ;;  %v785_v20 = vpack.c.bf16 (!%p168_p3), %v318_v17, %v316_v16  ;;  %v320_v22 = vld [vmem:[%s1137_s1 + $0x60] sm:$0xff] (!%p168_p3) }
   0xb   : > { %780 = vmatprep.subr.bf16.mxu0 (!%p168_p3), %v779_v9  ;;  %808 = vmatprep.subr.bf16.mxu1 (!%p168_p3), %v779_v9  ;;  %v787_v21 = vpack.c.bf16 (!%p168_p3), %v323_v19, %v321_v18  ;;  %v322_v23 = vld [vmem:[%s1137_s1 + $0x70] sm:$0xff] (!%p168_p3)  ;;  %v325_v24 = vld [vmem:[%s1137_s1 + $0x88] sm:$0xff] (!%p168_p3)  ;;  %v327_v25 = vld [vmem:[%s1137_s1 + $0x98] sm:$0xff] (!%p168_p3)  ;;  %v604_v3 = vsub.s32 (!%p168_p3), 0, %v603_v2  ;;  %v608_v5 = vsub.s32 (!%p168_p3), 1, %v603_v2 }
   0xc   : > { %v789_v26 = vpack.c.bf16 (!%p168_p3), %v322_v23, %v320_v22  ;;  %v791_v27 = vpack.c.bf16 (!%p168_p3), %v327_v25, %v325_v24  ;;  %v324_v28 = vld [vmem:[%s1137_s1 + $0x80] sm:$0xff] (!%p168_p3)  ;;  %v326_v29 = vld [vmem:[%s1137_s1 + $0x90] sm:$0xff] (!%p168_p3)  ;;  %v329_v30 = vld [vmem:[%s1137_s1 + $0xa8] sm:$0xff] (!%p168_p3) }
   0xd   : > { %v331_v31 = vld [vmem:[%s1137_s1 + $0xb8] sm:$0xff] (!%p168_p3)  ;;  %v793_v32 = vpack.c.bf16 (!%p168_p3), %v326_v29, %v324_v28  ;;  %v328_v34 = vld [vmem:[%s1137_s1 + $0xa0] sm:$0xff] (!%p168_p3)  ;;  %v330_v35 = vld [vmem:[%s1137_s1 + $0xb0] sm:$0xff] (!%p168_p3) }
   0xe   : > { %782 = vmatpush1.bf16.msra.mxu0 %v781_v14  ;;  %816 = vmatpush1.bf16.msra.mxu1 %v781_v14  ;;  %v795_v33 = vpack.c.bf16 %v331_v31, %v329_v30  ;;  %v333_v36 = vld [vmem:[%s1137_s1 + $0xc8] sm:$0xff]  ;;  %v335_v37 = vld [vmem:[%s1137_s1 + $0xd8] sm:$0xff]  ;;  %v797_v38 = vpack.c.bf16 %v330_v35, %v328_v34  ;;  %v332_v40 = vld [vmem:[%s1137_s1 + $0xc0] sm:$0xff]  ;;  %s1145_s10 = smov (!%p202_p4, %s767_s10), 31 }
   0xf   : > { %784 = vmatprep.subr.bf16.mxu0 %v783_v15  ;;  %809 = vmatprep.subr.bf16.mxu1 %v783_v15  ;;  %v799_v39 = vpack.c.bf16 %v335_v37, %v333_v36  ;;  %v334_v41 = vld [vmem:[%s1137_s1 + $0xd0] sm:$0xff]  ;;  %v337_v42 = vld [vmem:[%s1137_s1 + $0xe8] sm:$0xff]  ;;  %v339_v43 = vld [vmem:[%s1137_s1 + $0xf8] sm:$0xff]  ;;  %s768_s7 = sshll.u32 %s1145_s10, 3  ;;  %s774_s18 = sshll.u32 %s1145_s10, 4 }
  0x10   : > { %v801_v44 = vpack.c.bf16 %v334_v41, %v332_v40  ;;  %v803_v45 = vpack.c.bf16 %v339_v43, %v337_v42  ;;  %v336_v46 = vld [vmem:[%s1137_s1 + $0xe0] sm:$0xff]  ;;  %v338_v47 = vld [vmem:[%s1137_s1 + $0xf0] sm:$0xff]  ;;  %s1018_s11 = scalar_lea.vmem %s1136_s0, %s768_s7  ;;  %s1061_s21 = scalar_lea.vmem %s1139_s3, %s774_s18 }
  0x11   : > { %v805_v48 = vpack.c.bf16 %v338_v47, %v336_v46  ;;  %v292_v49 = vld [vmem:[%s1018_s11] sm:$0xff]  ;;  %v293_v51 = vld [vmem:[%s1018_s11 + $0x8] sm:$0xff]  ;;  %v294_v53 = vld [vmem:[%s1018_s11 + $0x10] sm:$0xff] }
  0x12   : > { %786 = vmatpush1.bf16.msra.mxu0 %v785_v20  ;;  %817 = vmatpush1.bf16.msra.mxu1 %v785_v20  ;;  %v300_v50 = vld [vmem:[%s1018_s11 + $0x40] sm:$0xff]  ;;  %v301_v52 = vld [vmem:[%s1018_s11 + $0x48] sm:$0xff]  ;;  %v302_v54 = vld [vmem:[%s1018_s11 + $0x50] sm:$0xff] }
  0x13   : > { %788 = vmatprep.subr.bf16.mxu0 %v787_v21  ;;  %810 = vmatprep.subr.bf16.mxu1 %v787_v21  ;;  %v295_v55 = vld [vmem:[%s1018_s11 + $0x18] sm:$0xff]  ;;  %v296_v57 = vld [vmem:[%s1018_s11 + $0x20] sm:$0xff]  ;;  %v297_v59 = vld [vmem:[%s1018_s11 + $0x28] sm:$0xff] }
  0x14   : > { %v303_v56 = vld [vmem:[%s1018_s11 + $0x58] sm:$0xff]  ;;  %v304_v58 = vld [vmem:[%s1018_s11 + $0x60] sm:$0xff]  ;;  %v305_v60 = vld [vmem:[%s1018_s11 + $0x68] sm:$0xff] }
  0x15   : > { %v298_v61 = vld [vmem:[%s1018_s11 + $0x30] sm:$0xff]  ;;  %v299_v63 = vld [vmem:[%s1018_s11 + $0x38] sm:$0xff]  ;;  %v600_v4 = vld [vmem:[%s1138_s2] sm:$0x3] }
  0x16   : > { %790 = vmatpush1.bf16.msra.mxu0 %v789_v26  ;;  %818 = vmatpush1.bf16.msra.mxu1 %v789_v26  ;;  %v306_v62 = vld [vmem:[%s1018_s11 + $0x70] sm:$0xff]  ;;  %v307_v0 = vld [vmem:[%s1018_s11 + $0x78] sm:$0xff]  ;;  %v1054_v6 = vrot.slane %v600_v4, %v604_v3  ;;  %v1056_v8 = vrot.slane %v600_v4, %v608_v5 }
  0x17   : > { %792 = vmatprep.subr.bf16.mxu0 %v791_v27  ;;  %811 = vmatprep.subr.bf16.mxu1 %v791_v27 }
  0x1a   : > { %794 = vmatpush1.bf16.msra.mxu0 %v793_v32  ;;  %819 = vmatpush1.bf16.msra.mxu1 %v793_v32 }
  0x1b   : > { %796 = vmatprep.subr.bf16.mxu0 %v795_v33  ;;  %812 = vmatprep.subr.bf16.mxu1 %v795_v33 }
  0x1e   : > { %798 = vmatpush1.bf16.msra.mxu0 %v797_v38  ;;  %820 = vmatpush1.bf16.msra.mxu1 %v797_v38 }
  0x1f   : > { %800 = vmatprep.subr.bf16.mxu0 %v799_v39  ;;  %813 = vmatprep.subr.bf16.mxu1 %v799_v39 }
  0x22   : > { %802 = vmatpush1.bf16.msra.mxu0 %v801_v44  ;;  %821 = vmatpush1.bf16.msra.mxu1 %v801_v44 }
  0x23   : > { %804 = vmatprep.subr.bf16.mxu0 %v803_v45  ;;  %814 = vmatprep.subr.bf16.mxu1 %v803_v45 }
  0x26   : > { %806 = vmatpush1.bf16.msra.mxu0 %v805_v48  ;;  %822 = vmatpush1.bf16.msra.mxu1 %v805_v48 }
  0x29   : > { %405 = vmatmul.mubr.f32.vlgmr.msra.gmra.mrb[0].mxu0 %v292_v49  ;;  %453 = vmatmul.mubr.f32.vlgmr.msra.gmra.mrb[0].mxu1 %v300_v50 }
  0x2a   : > { %410 = vmatprep.mubr.f32.mxu0 %v872_v7  ;;  %458 = vmatprep.mubr.f32.mxu1 %v872_v7 }
  0x2d   : > { %411 = vmatmul.mubr.f32.gmra.mrb[2].mxu0 %v293_v51  ;;  %459 = vmatmul.mubr.f32.gmra.mrb[2].mxu1 %v301_v52 }
  0x2e   : > { %416 = vmatprep.mubr.f32.mxu0 %v872_v7  ;;  %464 = vmatprep.mubr.f32.mxu1 %v872_v7 }
  0x31   : > { %417 = vmatmul.mubr.f32.gmra.mrb[4].mxu0 %v294_v53  ;;  %465 = vmatmul.mubr.f32.gmra.mrb[4].mxu1 %v302_v54 }
  0x32   : > { %422 = vmatprep.mubr.f32.mxu0 %v872_v7  ;;  %470 = vmatprep.mubr.f32.mxu1 %v872_v7 }
  0x35   : > { %423 = vmatmul.mubr.f32.gmra.mrb[6].mxu0 %v295_v55  ;;  %471 = vmatmul.mubr.f32.gmra.mrb[6].mxu1 %v303_v56 }
  0x36   : > { %428 = vmatprep.mubr.f32.mxu0 %v872_v7  ;;  %476 = vmatprep.mubr.f32.mxu1 %v872_v7 }
  0x39   : > { %429 = vmatmul.mubr.f32.gmra.mrb[8].mxu0 %v296_v57  ;;  %477 = vmatmul.mubr.f32.gmra.mrb[8].mxu1 %v304_v58 }
  0x3a   : > { %434 = vmatprep.mubr.f32.mxu0 %v872_v7  ;;  %482 = vmatprep.mubr.f32.mxu1 %v872_v7 }
  0x3d   : > { %435 = vmatmul.mubr.f32.gmra.mrb[10].mxu0 %v297_v59  ;;  %483 = vmatmul.mubr.f32.gmra.mrb[10].mxu1 %v305_v60 }
  0x3e   : > { %440 = vmatprep.mubr.f32.mxu0 %v872_v7  ;;  %488 = vmatprep.mubr.f32.mxu1 %v872_v7 }
  0x41   : > { %441 = vmatmul.mubr.f32.gmra.mrb[12].mxu0 %v298_v61  ;;  %489 = vmatmul.mubr.f32.gmra.mrb[12].mxu1 %v306_v62 }
  0x42   : > { %446 = vmatprep.mubr.f32.mxu0 %v872_v7  ;;  %494 = vmatprep.mubr.f32.mxu1 %v872_v7 }
  0x45   : > { %447 = vmatmul.mubr.f32.gmra.mrb[14].mxu0 %v299_v63  ;;  %495 = vmatmul.mubr.f32.gmra.mrb[14].mxu1 %v307_v0 }
  0xfc   : > { %v406_v7 = vpop.f32.mrb[0].mxu0  ;;  %v454_v9 = vpop.f32.mrb[0].mxu1 }
  0xfd   : > { %v612_v10 = vadd.f32 %v1054_v6, %v406_v7  ;;  %v628_v11 = vadd.f32 %v1054_v6, %v454_v9  ;;  %v408_v12 = vpop.f32.mrb[1].mxu0  ;;  %v456_v13 = vpop.f32.mrb[1].mxu1 }
  0xfe   : > { %v613_v14 = vadd.f32 %v1056_v8, %v408_v12  ;;  %v629_v15 = vadd.f32 %v1056_v8, %v456_v13 }
  0xff   : > { %644 = vst [vmem:[%s1061_s21] sm:$0xff] %v612_v10  ;;  %660 = vst [vmem:[%s1061_s21 + $0x80] sm:$0xff] %v628_v11 }
 0x100   : > { %645 = vst [vmem:[%s1061_s21 + $0x8] sm:$0xff] %v613_v14  ;;  %661 = vst [vmem:[%s1061_s21 + $0x88] sm:$0xff] %v629_v15  ;;  %v412_v16 = vpop.f32.mrb[2].mxu0  ;;  %v460_v17 = vpop.f32.mrb[2].mxu1 }
 0x101   : > { %v614_v18 = vadd.f32 %v1054_v6, %v412_v16  ;;  %v630_v19 = vadd.f32 %v1054_v6, %v460_v17  ;;  %v414_v20 = vpop.f32.mrb[3].mxu0  ;;  %v462_v21 = vpop.f32.mrb[3].mxu1 }
 0x102   : > { %v615_v22 = vadd.f32 %v1056_v8, %v414_v20  ;;  %v631_v23 = vadd.f32 %v1056_v8, %v462_v21 }
 0x103   : > { %646 = vst [vmem:[%s1061_s21 + $0x10] sm:$0xff] %v614_v18  ;;  %662 = vst [vmem:[%s1061_s21 + $0x90] sm:$0xff] %v630_v19 }
 0x104   : > { %647 = vst [vmem:[%s1061_s21 + $0x18] sm:$0xff] %v615_v22  ;;  %663 = vst [vmem:[%s1061_s21 + $0x98] sm:$0xff] %v631_v23  ;;  %v418_v24 = vpop.f32.mrb[4].mxu0  ;;  %v466_v25 = vpop.f32.mrb[4].mxu1 }
 0x105   : > { %v616_v26 = vadd.f32 %v1054_v6, %v418_v24  ;;  %v632_v27 = vadd.f32 %v1054_v6, %v466_v25  ;;  %v420_v28 = vpop.f32.mrb[5].mxu0  ;;  %v468_v29 = vpop.f32.mrb[5].mxu1 }
 0x106   : > { %v617_v30 = vadd.f32 %v1056_v8, %v420_v28  ;;  %v633_v31 = vadd.f32 %v1056_v8, %v468_v29 }
 0x107   : > { %648 = vst [vmem:[%s1061_s21 + $0x20] sm:$0xff] %v616_v26  ;;  %664 = vst [vmem:[%s1061_s21 + $0xa0] sm:$0xff] %v632_v27 }
 0x108   : > { %649 = vst [vmem:[%s1061_s21 + $0x28] sm:$0xff] %v617_v30  ;;  %665 = vst [vmem:[%s1061_s21 + $0xa8] sm:$0xff] %v633_v31  ;;  %v424_v32 = vpop.f32.mrb[6].mxu0  ;;  %v472_v33 = vpop.f32.mrb[6].mxu1 }
 0x109   : > { %v618_v34 = vadd.f32 %v1054_v6, %v424_v32  ;;  %v634_v35 = vadd.f32 %v1054_v6, %v472_v33  ;;  %v426_v36 = vpop.f32.mrb[7].mxu0  ;;  %v474_v37 = vpop.f32.mrb[7].mxu1 }
 0x10a   : > { %v619_v38 = vadd.f32 %v1056_v8, %v426_v36  ;;  %v635_v39 = vadd.f32 %v1056_v8, %v474_v37 }
 0x10b   : > { %650 = vst [vmem:[%s1061_s21 + $0x30] sm:$0xff] %v618_v34  ;;  %666 = vst [vmem:[%s1061_s21 + $0xb0] sm:$0xff] %v634_v35 }
 0x10c   : > { %651 = vst [vmem:[%s1061_s21 + $0x38] sm:$0xff] %v619_v38  ;;  %667 = vst [vmem:[%s1061_s21 + $0xb8] sm:$0xff] %v635_v39  ;;  %v430_v40 = vpop.f32.mrb[8].mxu0  ;;  %v478_v41 = vpop.f32.mrb[8].mxu1 }
 0x10d   : > { %v620_v42 = vadd.f32 %v1054_v6, %v430_v40  ;;  %v636_v43 = vadd.f32 %v1054_v6, %v478_v41  ;;  %v432_v44 = vpop.f32.mrb[9].mxu0  ;;  %v480_v45 = vpop.f32.mrb[9].mxu1 }
 0x10e   : > { %v621_v46 = vadd.f32 %v1056_v8, %v432_v44  ;;  %v637_v47 = vadd.f32 %v1056_v8, %v480_v45 }
 0x10f   : > { %652 = vst [vmem:[%s1061_s21 + $0x40] sm:$0xff] %v620_v42  ;;  %668 = vst [vmem:[%s1061_s21 + $0xc0] sm:$0xff] %v636_v43 }
 0x110   : > { %653 = vst [vmem:[%s1061_s21 + $0x48] sm:$0xff] %v621_v46  ;;  %669 = vst [vmem:[%s1061_s21 + $0xc8] sm:$0xff] %v637_v47  ;;  %v436_v48 = vpop.f32.mrb[10].mxu0  ;;  %v484_v49 = vpop.f32.mrb[10].mxu1 }
 0x111   : > { %v622_v50 = vadd.f32 %v1054_v6, %v436_v48  ;;  %v638_v51 = vadd.f32 %v1054_v6, %v484_v49  ;;  %v438_v52 = vpop.f32.mrb[11].mxu0  ;;  %v486_v53 = vpop.f32.mrb[11].mxu1 }
 0x112   : > { %v623_v54 = vadd.f32 %v1056_v8, %v438_v52  ;;  %v639_v55 = vadd.f32 %v1056_v8, %v486_v53 }
 0x113   : > { %654 = vst [vmem:[%s1061_s21 + $0x50] sm:$0xff] %v622_v50  ;;  %670 = vst [vmem:[%s1061_s21 + $0xd0] sm:$0xff] %v638_v51 }
 0x114   : > { %655 = vst [vmem:[%s1061_s21 + $0x58] sm:$0xff] %v623_v54  ;;  %671 = vst [vmem:[%s1061_s21 + $0xd8] sm:$0xff] %v639_v55  ;;  %v442_v56 = vpop.f32.mrb[12].mxu0  ;;  %v490_v57 = vpop.f32.mrb[12].mxu1 }
 0x115   : > { %v624_v58 = vadd.f32 %v1054_v6, %v442_v56  ;;  %v640_v59 = vadd.f32 %v1054_v6, %v490_v57  ;;  %v444_v60 = vpop.f32.mrb[13].mxu0  ;;  %v492_v61 = vpop.f32.mrb[13].mxu1 }
 0x116   : > { %v625_v62 = vadd.f32 %v1056_v8, %v444_v60  ;;  %v641_v63 = vadd.f32 %v1056_v8, %v492_v61 }
 0x117   : > { %656 = vst [vmem:[%s1061_s21 + $0x60] sm:$0xff] %v624_v58  ;;  %672 = vst [vmem:[%s1061_s21 + $0xe0] sm:$0xff] %v640_v59 }
 0x118   : > { %657 = vst [vmem:[%s1061_s21 + $0x68] sm:$0xff] %v625_v62  ;;  %673 = vst [vmem:[%s1061_s21 + $0xe8] sm:$0xff] %v641_v63  ;;  %v448_v0 = vpop.f32.mrb[14].mxu0  ;;  %v496_v1 = vpop.f32.mrb[14].mxu1 }
 0x119   : > { %v626_v2 = vadd.f32 %v1054_v6, %v448_v0  ;;  %v642_v3 = vadd.f32 %v1054_v6, %v496_v1  ;;  %v450_v4 = vpop.f32.mrb[15].mxu0  ;;  %v498_v5 = vpop.f32.mrb[15].mxu1 }
 0x11a   : > { %v627_v7 = vadd.f32 %v1056_v8, %v450_v4  ;;  %v643_v9 = vadd.f32 %v1056_v8, %v498_v5 }
 0x11b   : > { %658 = vst [vmem:[%s1061_s21 + $0x70] sm:$0xff] %v626_v2  ;;  %674 = vst [vmem:[%s1061_s21 + $0xf0] sm:$0xff] %v642_v3 }
 0x11c   : > { %659 = vst [vmem:[%s1061_s21 + $0x78] sm:$0xff] %v627_v7  ;;  %675 = vst [vmem:[%s1061_s21 + $0xf8] sm:$0xff] %v643_v9 }
 0x11d PF: > { %s13_s14 = sadd.s32 1, %s870_s14   ;;  %s1140_s12 = smov %s866_s13 }
 0x11e   : > { %p10_p5 = scmp.ge.s32.totalorder %s13_s14, 4   ;;  %s1141_s13 = smov %s1143_s15 }
 0x120   :  { %12 = sbr.rel (!%p10_p5) target bundleno = 2 (0x2), region = 73 }

</bundles_post_ra>
